<compile_context>
chip_gen: v7x
topology: tpu7x:2x2x1
jax: 0.10.0
libtpu: 0.0.40
codegen_flags: <defaults>
</compile_context>

<pallas_src>
import jax
import jax.numpy as jnp
from jax.experimental import pallas as pl
from jax.experimental.pallas import tpu as pltpu

INPUT_SIZE = 49
LAYER_1 = 64
LAYER_2 = 32
LAYER_3 = 16
NUM_CLASSES = 30


def _round_up(n, m):
    return ((n + m - 1) // m) * m


def _sigmoid(h):
    # sigmoid(x) == 0.5 * tanh(0.5 * x) + 0.5  -- one EUP push instead of exp + divide.
    return 0.5 * jnp.tanh(0.5 * h) + 0.5


def _mlp_kernel(x_ref,
                w1_ref, b1_ref,
                w2_ref, b2_ref,
                w3_ref, b3_ref,
                w4_ref, b4_ref,
                o_ref):
    cdt = w1_ref.dtype  # matmul operand dtype (bf16 by default)

    # layer_input + sigmoid (cast x tile to the compute dtype in-VMEM: free VPU work)
    x = x_ref[...].astype(cdt)
    h = jnp.dot(x, w1_ref[...], preferred_element_type=jnp.float32) + b1_ref[...]
    h = _sigmoid(h)

    # layer_hidden_one + sigmoid
    h = jnp.dot(h.astype(cdt), w2_ref[...],
                preferred_element_type=jnp.float32) + b2_ref[...]
    h = _sigmoid(h)

    # layer_hidden_two + sigmoid
    h = jnp.dot(h.astype(cdt), w3_ref[...],
                preferred_element_type=jnp.float32) + b3_ref[...]
    h = _sigmoid(h)

    # layer_output (no activation)
    out = jnp.dot(h.astype(cdt), w4_ref[...],
                  preferred_element_type=jnp.float32) + b4_ref[...]
    o_ref[...] = out.astype(o_ref.dtype)


def net_sigmoid_forward(x, params, *, block_b=4096, use_bf16=True):
    """Fused 4-layer MLP forward. x: (B, 49). Returns (B, 30) float32."""
    (w1, b1), (w2, b2), (w3, b3), (w4, b4) = params
    B = x.shape[0]

    compute_dtype = jnp.bfloat16 if use_bf16 else jnp.float32

    # Only promote x if it is not a floating type the kernel can cast cheaply.
    if x.dtype not in (jnp.float32, jnp.bfloat16):
        x = x.astype(jnp.float32)

    # --- batch tiling: fixed tile, multiple of 8; pad B only when needed ---
    block_b = max(8, _round_up(int(block_b), 8))
    block_b = min(block_b, _round_up(B, 8))      # don't over-pad tiny batches
    B_pad = _round_up(B, block_b)
    if B_pad != B:
        x = jnp.pad(x, ((0, B_pad - B), (0, 0)))  # zero rows: finite through sigmoid

    # Tiny parameter tensors: cast once (negligible), biases stay f32.
    w1c = w1.astype(compute_dtype)
    w2c = w2.astype(compute_dtype)
    w3c = w3.astype(compute_dtype)
    w4c = w4.astype(compute_dtype)
    b1c = b1.astype(jnp.float32)
    b2c = b2.astype(jnp.float32)
    b3c = b3.astype(jnp.float32)
    b4c = b4.astype(jnp.float32)

    grid = (B_pad // block_b,)

    def batch_spec(feat):
        return pl.BlockSpec((block_b, feat), lambda i: (i, 0))

    def full_spec(shape):
        # whole (tiny) parameter resident in VMEM; constant index map -> no re-DMA
        return pl.BlockSpec(shape, lambda i: tuple(0 for _ in shape))

    out = pl.pallas_call(
        _mlp_kernel,
        out_shape=jax.ShapeDtypeStruct((B_pad, NUM_CLASSES), jnp.float32),
        grid_spec=pltpu.PrefetchScalarGridSpec(
            num_scalar_prefetch=0,
            grid=grid,
            in_specs=[
                batch_spec(INPUT_SIZE),
                full_spec(w1c.shape), full_spec(b1c.shape),
                full_spec(w2c.shape), full_spec(b2c.shape),
                full_spec(w3c.shape), full_spec(b3c.shape),
                full_spec(w4c.shape), full_spec(b4c.shape),
            ],
            out_specs=batch_spec(NUM_CLASSES),
        ),
        compiler_params=pltpu.CompilerParams(
            # batch tiles are independent -> shard across TensorCores on v7x
            dimension_semantics=("parallel",),
            # generous but generation-safe cap (fits v5e/v6e/v7x scoped VMEM)
            vmem_limit_bytes=32 * 1024 * 1024,
        ),
    )(x, w1c, b1c, w2c, b2c, w3c, b3c, w4c, b4c)

    if B_pad != B:
        out = out[:B]
    return out


def init_params(key):
    """Deterministic init mimicking nn.Linear's U(-1/sqrt(fan_in), 1/sqrt(fan_in)).
    Weights stored (in_features, out_features), i.e. transposed vs. PyTorch."""
    dims = [(INPUT_SIZE, LAYER_1), (LAYER_1, LAYER_2),
            (LAYER_2, LAYER_3), (LAYER_3, NUM_CLASSES)]
    params = []
    for (fan_in, fan_out) in dims:
        key, kw, kb = jax.random.split(key, 3)
        bound = 1.0 / jnp.sqrt(jnp.float32(fan_in))
        w = jax.random.uniform(kw, (fan_in, fan_out), jnp.float32, -bound, bound)
        b = jax.random.uniform(kb, (1, fan_out), jnp.float32, -bound, bound)
        params.append((w, b))
    return params


def reference_forward(x, params, compute_dtype=jnp.float32):
    """Pure-JAX reference; compute_dtype emulates the kernel's matmul operand dtype."""
    h = x
    for idx, (w, b) in enumerate(params):
        h = jnp.dot(h.astype(compute_dtype), w.astype(compute_dtype),
                    preferred_element_type=jnp.float32) + b.astype(jnp.float32)
        if idx < 3:
            h = jax.nn.sigmoid(h)
    return h


if __name__ == "__main__":
    key = jax.random.PRNGKey(0)
    key, kx = jax.random.split(key)

    batch = 8
    x = jax.random.normal(kx, (batch, INPUT_SIZE), jnp.float32)
    params = init_params(key)

    out = net_sigmoid_forward(x, params)
    out = jax.block_until_ready(out)

    assert out.shape == (batch, NUM_CLASSES)
    assert bool(jnp.all(jnp.isfinite(out)))

    # Match against a reference that emulates the kernel's bf16 MXU operands.
    ref_bf16 = reference_forward(x, params, compute_dtype=jnp.bfloat16)
    assert jnp.allclose(out, ref_bf16, atol=1e-2, rtol=1e-2), "mismatch vs bf16 reference"

    # Loose sanity check against the full-f32 reference (bf16 operand rounding).
    ref_f32 = reference_forward(x, params, compute_dtype=jnp.float32)
    assert jnp.allclose(out, ref_f32, atol=5e-2, rtol=5e-2), "mismatch vs f32 reference"

    print("KERNEL_OK")
</pallas_src>

<mosaic_0001>
module attributes {stable_mosaic.version = 11 : i64} {
  func.func @_mlp_kernel(%arg0: i32, %arg1: memref<8x49xf32, #tpu.memory_space<vmem>>, %arg2: memref<49x64xbf16, #tpu.memory_space<vmem>>, %arg3: memref<1x64xf32, #tpu.memory_space<vmem>>, %arg4: memref<64x32xbf16, #tpu.memory_space<vmem>>, %arg5: memref<1x32xf32, #tpu.memory_space<vmem>>, %arg6: memref<32x16xbf16, #tpu.memory_space<vmem>>, %arg7: memref<1x16xf32, #tpu.memory_space<vmem>>, %arg8: memref<16x30xbf16, #tpu.memory_space<vmem>>, %arg9: memref<1x30xf32, #tpu.memory_space<vmem>>, %arg10: memref<8x30xf32, #tpu.memory_space<vmem>>) attributes {dimension_semantics = [#tpu.dimension_semantics<parallel>], iteration_bounds = array<i64: 1>, scalar_prefetch = 0 : i64, scratch_operands = 0 : i64, tpu.core_type = #tpu.core_type<tc>, window_params = [{transform_indices = @transform_0, window_bounds = array<i64: 8, 49>}, {pipeline_mode = #tpu.pipeline_mode<synchronous>, transform_indices = @transform_1, window_bounds = array<i64: 49, 64>}, {pipeline_mode = #tpu.pipeline_mode<synchronous>, transform_indices = @transform_2, window_bounds = array<i64: 1, 64>}, {pipeline_mode = #tpu.pipeline_mode<synchronous>, transform_indices = @transform_3, window_bounds = array<i64: 64, 32>}, {pipeline_mode = #tpu.pipeline_mode<synchronous>, transform_indices = @transform_4, window_bounds = array<i64: 1, 32>}, {pipeline_mode = #tpu.pipeline_mode<synchronous>, transform_indices = @transform_5, window_bounds = array<i64: 32, 16>}, {pipeline_mode = #tpu.pipeline_mode<synchronous>, transform_indices = @transform_6, window_bounds = array<i64: 1, 16>}, {pipeline_mode = #tpu.pipeline_mode<synchronous>, transform_indices = @transform_7, window_bounds = array<i64: 16, 30>}, {pipeline_mode = #tpu.pipeline_mode<synchronous>, transform_indices = @transform_8, window_bounds = array<i64: 1, 30>}, {transform_indices = @transform_9, window_bounds = array<i64: 8, 30>}]} {
    %c0 = arith.constant 0 : index
    %c0_0 = arith.constant 0 : index
    %0 = vector.load %arg1[%c0, %c0_0] : memref<8x49xf32, #tpu.memory_space<vmem>>, vector<8x49xf32>
    %1 = arith.truncf %0 : vector<8x49xf32> to vector<8x49xbf16>
    %c0_1 = arith.constant 0 : index
    %c0_2 = arith.constant 0 : index
    %2 = vector.load %arg2[%c0_1, %c0_2] : memref<49x64xbf16, #tpu.memory_space<vmem>>, vector<49x64xbf16>
    %cst = arith.constant dense<0.000000e+00> : vector<8x64xf32>
    %3 = tpu.matmul %1, %2, %cst {dimension_numbers = #tpu.dot_dimension_numbers<[1], [0], [0], [1], [0, 0, 1, 1], [], []>} : vector<8x49xbf16>, vector<49x64xbf16>, vector<8x64xf32> -> vector<8x64xf32>
    %c0_3 = arith.constant 0 : index
    %c0_4 = arith.constant 0 : index
    %4 = vector.load %arg3[%c0_3, %c0_4] : memref<1x64xf32, #tpu.memory_space<vmem>>, vector<1x64xf32>
    %5 = vector.broadcast %4 : vector<1x64xf32> to vector<8x64xf32>
    %6 = arith.addf %3, %5 : vector<8x64xf32>
    %cst_5 = arith.constant 5.000000e-01 : f32
    %7 = vector.broadcast %cst_5 : f32 to vector<8x64xf32>
    %8 = arith.mulf %7, %6 : vector<8x64xf32>
    %9 = math.tanh %8 : vector<8x64xf32>
    %cst_6 = arith.constant 5.000000e-01 : f32
    %10 = vector.broadcast %cst_6 : f32 to vector<8x64xf32>
    %11 = arith.mulf %10, %9 : vector<8x64xf32>
    %cst_7 = arith.constant 5.000000e-01 : f32
    %12 = vector.broadcast %cst_7 : f32 to vector<8x64xf32>
    %13 = arith.addf %11, %12 : vector<8x64xf32>
    %14 = arith.truncf %13 : vector<8x64xf32> to vector<8x64xbf16>
    %c0_8 = arith.constant 0 : index
    %c0_9 = arith.constant 0 : index
    %15 = vector.load %arg4[%c0_8, %c0_9] : memref<64x32xbf16, #tpu.memory_space<vmem>>, vector<64x32xbf16>
    %cst_10 = arith.constant dense<0.000000e+00> : vector<8x32xf32>
    %16 = tpu.matmul %14, %15, %cst_10 {dimension_numbers = #tpu.dot_dimension_numbers<[1], [0], [0], [1], [0, 0, 1, 1], [], []>} : vector<8x64xbf16>, vector<64x32xbf16>, vector<8x32xf32> -> vector<8x32xf32>
    %c0_11 = arith.constant 0 : index
    %c0_12 = arith.constant 0 : index
    %17 = vector.load %arg5[%c0_11, %c0_12] : memref<1x32xf32, #tpu.memory_space<vmem>>, vector<1x32xf32>
    %18 = vector.broadcast %17 : vector<1x32xf32> to vector<8x32xf32>
    %19 = arith.addf %16, %18 : vector<8x32xf32>
    %cst_13 = arith.constant 5.000000e-01 : f32
    %20 = vector.broadcast %cst_13 : f32 to vector<8x32xf32>
    %21 = arith.mulf %20, %19 : vector<8x32xf32>
    %22 = math.tanh %21 : vector<8x32xf32>
    %cst_14 = arith.constant 5.000000e-01 : f32
    %23 = vector.broadcast %cst_14 : f32 to vector<8x32xf32>
    %24 = arith.mulf %23, %22 : vector<8x32xf32>
    %cst_15 = arith.constant 5.000000e-01 : f32
    %25 = vector.broadcast %cst_15 : f32 to vector<8x32xf32>
    %26 = arith.addf %24, %25 : vector<8x32xf32>
    %27 = arith.truncf %26 : vector<8x32xf32> to vector<8x32xbf16>
    %c0_16 = arith.constant 0 : index
    %c0_17 = arith.constant 0 : index
    %28 = vector.load %arg6[%c0_16, %c0_17] : memref<32x16xbf16, #tpu.memory_space<vmem>>, vector<32x16xbf16>
    %cst_18 = arith.constant dense<0.000000e+00> : vector<8x16xf32>
    %29 = tpu.matmul %27, %28, %cst_18 {dimension_numbers = #tpu.dot_dimension_numbers<[1], [0], [0], [1], [0, 0, 1, 1], [], []>} : vector<8x32xbf16>, vector<32x16xbf16>, vector<8x16xf32> -> vector<8x16xf32>
    %c0_19 = arith.constant 0 : index
    %c0_20 = arith.constant 0 : index
    %30 = vector.load %arg7[%c0_19, %c0_20] : memref<1x16xf32, #tpu.memory_space<vmem>>, vector<1x16xf32>
    %31 = vector.broadcast %30 : vector<1x16xf32> to vector<8x16xf32>
    %32 = arith.addf %29, %31 : vector<8x16xf32>
    %cst_21 = arith.constant 5.000000e-01 : f32
    %33 = vector.broadcast %cst_21 : f32 to vector<8x16xf32>
    %34 = arith.mulf %33, %32 : vector<8x16xf32>
    %35 = math.tanh %34 : vector<8x16xf32>
    %cst_22 = arith.constant 5.000000e-01 : f32
    %36 = vector.broadcast %cst_22 : f32 to vector<8x16xf32>
    %37 = arith.mulf %36, %35 : vector<8x16xf32>
    %cst_23 = arith.constant 5.000000e-01 : f32
    %38 = vector.broadcast %cst_23 : f32 to vector<8x16xf32>
    %39 = arith.addf %37, %38 : vector<8x16xf32>
    %40 = arith.truncf %39 : vector<8x16xf32> to vector<8x16xbf16>
    %c0_24 = arith.constant 0 : index
    %c0_25 = arith.constant 0 : index
    %41 = vector.load %arg8[%c0_24, %c0_25] : memref<16x30xbf16, #tpu.memory_space<vmem>>, vector<16x30xbf16>
    %cst_26 = arith.constant dense<0.000000e+00> : vector<8x30xf32>
    %42 = tpu.matmul %40, %41, %cst_26 {dimension_numbers = #tpu.dot_dimension_numbers<[1], [0], [0], [1], [0, 0, 1, 1], [], []>} : vector<8x16xbf16>, vector<16x30xbf16>, vector<8x30xf32> -> vector<8x30xf32>
    %c0_27 = arith.constant 0 : index
    %c0_28 = arith.constant 0 : index
    %43 = vector.load %arg9[%c0_27, %c0_28] : memref<1x30xf32, #tpu.memory_space<vmem>>, vector<1x30xf32>
    %44 = vector.broadcast %43 : vector<1x30xf32> to vector<8x30xf32>
    %45 = arith.addf %42, %44 : vector<8x30xf32>
    %c0_29 = arith.constant 0 : index
    %c0_30 = arith.constant 0 : index
    %46 = vector.load %arg10[%c0_29, %c0_30] : memref<8x30xf32, #tpu.memory_space<vmem>>, vector<8x30xf32>
    tpu.vector_store %arg10[%c0_29, %c0_30], %45 {strides = array<i32>} : memref<8x30xf32, #tpu.memory_space<vmem>>, vector<8x30xf32>,
    return
  }
  func.func @transform_0(%arg0: i32) -> (i32, i32) {
    %c0_i32 = arith.constant 0 : i32
    %c0_i32_0 = arith.constant 0 : i32
    return %arg0, %c0_i32 : i32, i32
  }
  func.func @transform_1(%arg0: i32) -> (i32, i32) {
    %c0_i32 = arith.constant 0 : i32
    %c0_i32_0 = arith.constant 0 : i32
    %c0_i32_1 = arith.constant 0 : i32
    return %c0_i32, %c0_i32_0 : i32, i32
  }
  func.func @transform_2(%arg0: i32) -> (i32, i32) {
    %c0_i32 = arith.constant 0 : i32
    %c0_i32_0 = arith.constant 0 : i32
    %c0_i32_1 = arith.constant 0 : i32
    return %c0_i32, %c0_i32_0 : i32, i32
  }
  func.func @transform_3(%arg0: i32) -> (i32, i32) {
    %c0_i32 = arith.constant 0 : i32
    %c0_i32_0 = arith.constant 0 : i32
    %c0_i32_1 = arith.constant 0 : i32
    return %c0_i32, %c0_i32_0 : i32, i32
  }
  func.func @transform_4(%arg0: i32) -> (i32, i32) {
    %c0_i32 = arith.constant 0 : i32
    %c0_i32_0 = arith.constant 0 : i32
    %c0_i32_1 = arith.constant 0 : i32
    return %c0_i32, %c0_i32_0 : i32, i32
  }
  func.func @transform_5(%arg0: i32) -> (i32, i32) {
    %c0_i32 = arith.constant 0 : i32
    %c0_i32_0 = arith.constant 0 : i32
    %c0_i32_1 = arith.constant 0 : i32
    return %c0_i32, %c0_i32_0 : i32, i32
  }
  func.func @transform_6(%arg0: i32) -> (i32, i32) {
    %c0_i32 = arith.constant 0 : i32
    %c0_i32_0 = arith.constant 0 : i32
    %c0_i32_1 = arith.constant 0 : i32
    return %c0_i32, %c0_i32_0 : i32, i32
  }
  func.func @transform_7(%arg0: i32) -> (i32, i32) {
    %c0_i32 = arith.constant 0 : i32
    %c0_i32_0 = arith.constant 0 : i32
    %c0_i32_1 = arith.constant 0 : i32
    return %c0_i32, %c0_i32_0 : i32, i32
  }
  func.func @transform_8(%arg0: i32) -> (i32, i32) {
    %c0_i32 = arith.constant 0 : i32
    %c0_i32_0 = arith.constant 0 : i32
    %c0_i32_1 = arith.constant 0 : i32
    return %c0_i32, %c0_i32_0 : i32, i32
  }
  func.func @transform_9(%arg0: i32) -> (i32, i32) {
    %c0_i32 = arith.constant 0 : i32
    %c0_i32_0 = arith.constant 0 : i32
    return %arg0, %c0_i32 : i32, i32
  }
}

</mosaic_0001>

<bundles_post_ra>
// kernel: tpu_custom_call.1
= control target key start
LH: loop header
LB: loop body
LE: loop exit
PB: predicated region body
PF: predicated region fallthrough
CT: control target
= control target key end

     0   :  { %v478_v1 = vmov 0.0   ;;  %vm75_vm0 = vcmask 1040384   ;;  %v479_v5 = vmov 0   ;;  %vm480_vm1 = vmmov 0   ;;  %s596_s0 = inlined_call_operand.vmem [shape: f32[8,49], index: 0, kind: input, shape index: {}]   ;;  %s597_s1 = inlined_call_operand.vmem [shape: bf16[49,64], index: 1, kind: input, shape index: {}]   ;;  %s598_s2 = inlined_call_operand.vmem [shape: f32[1,64], index: 2, kind: input, shape index: {}]   ;;  %s599_s3 = inlined_call_operand.vmem [shape: bf16[64,32], index: 3, kind: input, shape index: {}]   ;;  %s600_s4 = inlined_call_operand.vmem [shape: f32[1,32], index: 4, kind: input, shape index: {}]   ;;  %s601_s5 = inlined_call_operand.vmem [shape: bf16[32,16], index: 5, kind: input, shape index: {}]   ;;  %s602_s6 = inlined_call_operand.vmem [shape: f32[1,16], index: 6, kind: input, shape index: {}]   ;;  %s603_s7 = inlined_call_operand.vmem [shape: bf16[16,30], index: 7, kind: input, shape index: {}]   ;;  %s604_s8 = inlined_call_operand.vmem [shape: f32[1,30], index: 8, kind: input, shape index: {}]   ;;  %s605_s9 = inlined_call_operand.hbm [shape: f32[8,30], index: 9, kind: output, shape index: {}]  }
   0x1   :  { %v437_v0 = vld [vmem:[%s597_s1] sm:$0xff]   ;;  %395 = vmatprep.subr.bf16.mxu0 %v478_v1  ;;  %407 = vmatprep.subr.bf16.mxu1 %v478_v1  ;;  %v438_v2 = vld [vmem:[%s597_s1 + $0x8] sm:$0xff]   ;;  %v439_v3 = vld [vmem:[%s597_s1 + $0x10] sm:$0xff]   ;;  %v77_v6 = vsel %vm75_vm0, 65535, %v479_v5 }
   0x2   :  { %396 = vmatpush3.bf16.msra.mxu0 %v437_v0  ;;  %v440_v4 = vld [vmem:[%s597_s1 + $0x18] ss:$0 sps:$4 sm:$0x11]   ;;  %403 = vmatprep.mubr.msk.bf16.mxu0 %vm480_vm1, %v478_v1 }
   0x3   :  { %397 = vmatprep.subr.bf16.mxu0 %v478_v1  ;;  %415 = vmatprep.mubr.msk.bf16.mxu1 %vm480_vm1, %v478_v1 }
   0x6   :  { %398 = vmatpush3.bf16.msra.mxu0 %v438_v2 }
   0x7   :  { %399 = vmatprep.subr.bf16.mxu0 %v478_v1 }
   0x8   :  { %14 = vsyncpa [#allocation3], 0  ;;  %v79_v7 = vand.u32 %v440_v4, %v77_v6  ;;  %v34_v8 = vld [vmem:[%s596_s0] sm:$0xff]  ;;  %vm71_vm2 = vcmask 400384   ;;  %v442_v11 = vld [vmem:[%s599_s3 + $0x8] sm:$0xff]   ;;  %vm165_vm3 = vcmask 523264  }
   0x9   :  { %v35_v9 = vpack.c.bf16 %v34_v8, %v34_v8  ;;  %v441_v10 = vld [vmem:[%s599_s3] sm:$0xff]   ;;  %v443_v12 = vld [vmem:[%s599_s3 + $0x10] sm:$0xff]   ;;  %v444_v13 = vld [vmem:[%s599_s3 + $0x18] sm:$0xff]   ;;  %vm237_vm4 = vcmask 261120   ;;  %vm301_vm5 = vcmask 130048   ;;  %s481_s13 = smov [#allocation2]  }
   0xa   :  { %400 = vmatpush3.bf16.msra.mxu0 %v439_v3  ;;  %408 = vmatpush3.bf16.msra.mxu1 %v441_v10  ;;  %v361_v14 = vld [vmem:[%s598_s2] ss:$0 sm:$0xff]  ;;  %v446_v26 = vld [vmem:[%s601_s5 + $0x8] sm:$0xff]   ;;  %s353_s14 = sshll.u32 %s481_s13, 4  ;;  %vm345_vm6 = vcmask 244736   ;;  %s354_s14 = int_to_ptr.vmem [resolvable:$true] %s353_s14 }
   0xb   :  { %401 = vmatprep.subr.bf16.mxu0 %v478_v1  ;;  %409 = vmatprep.subr.bf16.mxu1 %v478_v1  ;;  %v445_v25 = vld [vmem:[%s601_s5] sm:$0xff]   ;;  %p459_p1 = scmp.lt.s32.totalorder %s354_s14, %s354_s14 }
   0xc   :  { %v367_v27 = vld [vmem:[%s600_s4] ss:$0 sm:$0xff] }
   0xd   :  { %v447_v38 = vld [vmem:[%s603_s7] sm:$0xff]  }
   0xe   :  { %402 = vmatpush3.bf16.msra.mxu0 %v79_v7  ;;  %410 = vmatpush3.bf16.msra.mxu1 %v442_v11  ;;  %v373_v39 = vld [vmem:[%s602_s6] ss:$0 sm:$0xff]  ;;  %s454_s6 = scalar_lea.vmem %s354_s14, 128 }
   0xf   :  { %419 = vmatprep.subr.bf16.mxu0 %v478_v1  ;;  %411 = vmatprep.subr.bf16.mxu1 %v478_v1  ;;  %v377_v50 = vld [vmem:[%s604_s8] ss:$0 sm:$0xff]  ;;  %p455_p0 = scmp.ne.s32.totalorder %s354_s14, %s454_s6  ;;  %p460_p2 = scmp.lt.s32.totalorder %s454_s6, %s454_s6 }
  0x11   :  { %404 = vmatmul.mubr.msk.bf16.vlgmr.msra.gmra.mrb[0].mxu0 %vm71_vm2, %v35_v9  ;;  %p461_p3 = por %p460_p2, %p459_p1 }
  0x12   :  { %423 = vmatprep.mubr.msk.bf16.mxu0 %vm480_vm1, %v478_v1  ;;  %412 = vmatpush3.bf16.msra.mxu1 %v443_v12 }
  0x13   :  { %413 = vmatprep.subr.bf16.mxu1 %v478_v1  ;;  %420 = vmatpush3.bf16.msra.mxu0 %v445_v25  ;;  %p462_p4 = pnand %p461_p3, %p455_p0 }
  0x14   :  { %421 = vmatprep.subr.bf16.mxu0 %v478_v1 }
  0x16   :  { %414 = vmatpush3.bf16.msra.mxu1 %v444_v13 }
  0x17   :  { %427 = vmatprep.subr.bf16.mxu1 %v478_v1  ;;  %422 = vmatpush3.bf16.msra.mxu0 %v446_v26 }
  0xe4   :  { %v115_v15 = vpop.f32.mrb[0].mxu0 }
  0xe5   :  { %v116_v16 = vadd.f32 %v361_v14, %v115_v15  ;;  %v405_v17 = vpop.f32.mrb[1].mxu0 }
  0xe6   :  { %v118_v18 = vpop.f32.mrb[2].mxu0 }
  0xe7   :  { %v121_v19 = vmul.f32 0.5, %v116_v16  ;;  %v406_v20 = vpop.f32.mrb[3].mxu0 }
  0xe9   :  { %448 = vtanh.f32 %v121_v19 }
  0xf3   :  { %v449_v21 = vpop.eup %448 }
  0xf4   :  { %v123_v22 = vmul.f32 0.5, %v449_v21 }
  0xf6   :  { %v124_v23 = vadd.f32 0.5, %v123_v22 }
  0xf8   :  { %v125_v24 = vpack.c.bf16 %v124_v23, %v124_v23 }
  0xfa   :  { %416 = vmatmul.mubr.msk.bf16.vlgmr.msra.gmra.mrb[0].mxu1 %vm165_vm3, %v125_v24 }
  0xfb   :  { %429 = vmatprep.mubr.msk.bf16.mxu1 %vm480_vm1, %v478_v1  ;;  %428 = vmatpush3.bf16.msra.mxu1 %v447_v38 }
 0x1cd   :  { %v203_v28 = vpop.f32.mrb[0].mxu1 }
 0x1ce   :  { %v204_v29 = vadd.f32 %v367_v27, %v203_v28  ;;  %v417_v30 = vpop.f32.mrb[1].mxu1 }
 0x1cf   :  { %v206_v31 = vpop.f32.mrb[2].mxu1 }
 0x1d0   :  { %v209_v32 = vmul.f32 0.5, %v204_v29  ;;  %v418_v33 = vpop.f32.mrb[3].mxu1 }
 0x1d2   :  { %450 = vtanh.f32 %v209_v32 }
 0x1dc   :  { %v451_v34 = vpop.eup %450 }
 0x1dd   :  { %v211_v35 = vmul.f32 0.5, %v451_v34 }
 0x1df   :  { %v212_v36 = vadd.f32 0.5, %v211_v35 }
 0x1e1   :  { %v213_v37 = vpack.c.bf16 %v212_v36, %v212_v36 }
 0x1e3   :  { %424 = vmatmul.mubr.msk.bf16.vlgmr.msra.gmra.mrb[4].mxu0 %vm237_vm4, %v213_v37 }
 0x2b6   :  { %v275_v40 = vpop.f32.mrb[4].mxu0 }
 0x2b7   :  { %v276_v41 = vadd.f32 %v373_v39, %v275_v40  ;;  %v425_v42 = vpop.f32.mrb[5].mxu0 }
 0x2b8   :  { %v278_v43 = vpop.f32.mrb[6].mxu0 }
 0x2b9   :  { %v281_v44 = vmul.f32 0.5, %v276_v41  ;;  %v426_v45 = vpop.f32.mrb[7].mxu0 }
 0x2bb   :  { %452 = vtanh.f32 %v281_v44 }
 0x2c5   :  { %v453_v46 = vpop.eup %452 }
 0x2c6   :  { %v283_v47 = vmul.f32 0.5, %v453_v46 }
 0x2c8   :  { %v284_v48 = vadd.f32 0.5, %v283_v47 }
 0x2ca   :  { %v285_v49 = vpack.c.bf16 %v284_v48, %v284_v48 }
 0x2cc   :  { %430 = vmatmul.mubr.msk.bf16.vlgmr.msra.gmra.mrb[4].mxu1 %vm301_vm5, %v285_v49 }
 0x39f   :  { %v339_v51 = vpop.f32.mrb[4].mxu1 }
 0x3a0   :  { %v340_v52 = vadd.f32 %v377_v50, %v339_v51  ;;  %v431_v53 = vpop.f32.mrb[5].mxu1 }
 0x3a1   :  { %v342_v54 = vpop.f32.mrb[6].mxu1 }
 0x3a2   :  { %v432_v55 = vpop.f32.mrb[7].mxu1  ;;  %346 = vst.msk [vmem:[#allocation2] sm:$0xff] %vm345_vm6, %v340_v52 }
 0x3a3   :  { %465 = shalt.err (!%p462_p4)
}
 0x3a4   :  { %s466_s8 = scalar_lea.hbm %s605_s9, 128 }
 0x3a5   :  { %p467_p5 = scmp.ne.s32.totalorder %s605_s9, %s466_s8  ;;  %p470_p6 = scmp.lt.u32.totalorder %s466_s8, %s605_s9 }
 0x3a7   :  { %p472_p7 = pnand %p470_p6, %p467_p5 }
 0x3a9   :  { %475 = shalt.err (!%p472_p7)
}
 0x3aa   :  { %356 = dma.vmem_to_hbm [thread:$0]  %s354_s14, 128, %s605_s9, [#allocation3]  }
 0x3ab   :  { %476 = dma.done.wait [#allocation3], 128  }
 0x3ac   :  { %477 = vsyncadd [#allocation3], 4294967168 }
 0x3ad   :  { %360 = vsyncpa [#allocation3], 1 }

</bundles_post_ra>
